<compile_context>
chip_gen: v7x
topology: tpu7x:2x2x1
jax: 0.10.0
libtpu: 0.0.40
codegen_flags: <defaults>
</compile_context>

<pallas_src>
import functools
import math

import jax
import jax.numpy as jnp
from jax.experimental import pallas as pl
from jax.experimental.pallas import tpu as pltpu

_INV_SQRT2 = 0.7071067811865476
_SQRT_2_OVER_PI = 0.7978845608028654


def _shift_gelu_kernel(x_ref, b_ref, o_ref, *, approximate: bool):
    # Elementwise hot path: shift + GELU, computed in f32.
    x = x_ref[...].astype(jnp.float32) + b_ref[...].astype(jnp.float32)
    if approximate:
        # tanh-approx GELU: transcendental lands on the EUP slot instead of a
        # long erf polynomial on the VALU.  Opt-in only (numerics differ
        # slightly from Trident's exact erf).
        y = 0.5 * x * (1.0 + jnp.tanh(_SQRT_2_OVER_PI * (x + 0.044715 * (x * x * x))))
    else:
        # Exact erf GELU (Trident parity).
        y = 0.5 * x * (1.0 + jax.lax.erf(x * _INV_SQRT2))
    o_ref[...] = y.astype(o_ref.dtype)


def _round_up(a: int, b: int) -> int:
    return ((a + b - 1) // b) * b


def _cdiv(a: int, b: int) -> int:
    return (a + b - 1) // b


def _vmem_capacity_bytes() -> int:
    """Best-effort VMEM capacity query; conservative (v7x) fallback."""
    try:
        cap = getattr(pltpu.get_tpu_info(), "vmem_capacity_bytes", None)
        if cap:
            return int(cap)
    except Exception:
        pass
    return 64 * 1024 * 1024


def shift_gelu(x: jax.Array, bias: jax.Array, *,
               approximate: bool = False,
               target_block_bytes: int = 4 * 1024 * 1024) -> jax.Array:
    """out = GELU(x + bias), bias broadcast over all leading dims of x."""
    orig_shape = x.shape
    N = orig_shape[-1]
    assert bias.shape == (N,), (bias.shape, N)
    M = int(math.prod(orig_shape[:-1])) if len(orig_shape) > 1 else 1
    x2 = x.reshape(M, N)

    itemsize = jnp.dtype(x.dtype).itemsize
    sublane = {4: 8, 2: 16, 1: 32}.get(itemsize, 8)   # packing-aware sublanes

    # Generation-aware tile budget: 2x(in)+2x(out) double-buffered tiles must
    # stay well inside VMEM (64 MiB on v7x, 128 MiB on v5e/v6e).
    vmem_cap = _vmem_capacity_bytes()
    target = max(256 * 1024, min(target_block_bytes, vmem_cap // 6))

    # --- Lane density: fold k rows into one so Nk is a multiple of 128 -------
    # (lane-dense, unmasked vst/vld; zero wasted lanes for small N).
    k = (128 // math.gcd(N, 128)) if N < 128 else 1
    Nk = k * N

    # Pad rows only to a multiple of k (at most k-1 rows).  The ragged last
    # row tile of the grid is handled by Pallas masking, so no tile-sized
    # padding (and no extra HBM passes) is needed.
    Mp = _round_up(M, k)
    if Mp != M:
        x2 = jnp.pad(x2, ((0, Mp - M), (0, 0)))
    Mg = Mp // k
    xg = x2.reshape(Mg, Nk)
    bias_k = (jnp.tile(bias, k) if k > 1 else bias).reshape(1, Nk)

    # --- Tile sizing from the real itemsize ----------------------------------
    if Nk % 128 == 0 and Nk * sublane * itemsize > target:
        # Very wide rows: tile the lane axis too (128-multiple blocks) so a
        # single block never exceeds the per-generation VMEM budget.
        tm = sublane
        tn = min(Nk, max(128, (target // (sublane * itemsize)) // 128 * 128))
    else:
        tn = Nk
        tm = max(sublane, target // max(1, tn * itemsize))
        tm = min(tm, max(sublane, (Mg // sublane) * sublane))  # don't exceed data
        tm = (tm // sublane) * sublane

    # v7x megacore / pipelining: ensure a few grid steps so both TensorCores
    # get work and DMA overlaps compute (only when there is enough data).
    min_steps = 8
    if _cdiv(Mg, tm) * _cdiv(Nk, tn) < min_steps and Mg >= min_steps * sublane:
        tm = max(sublane, ((Mg // min_steps) // sublane) * sublane)

    if Mg < sublane:
        tm = Mg   # full-extent block for tiny inputs (legal: equals array dim)

    grid = (_cdiv(Mg, tm), _cdiv(Nk, tn))

    # vmem limit from actual footprint: 2x double-buffered input tile,
    # 2x output tile, bias (double-buffered), plus compiler slack.
    tile_bytes = tm * tn * itemsize
    bias_bytes = tn * jnp.dtype(bias.dtype).itemsize
    vmem_limit = min(vmem_cap,
                     max(32 * 1024 * 1024,
                         4 * tile_bytes + 2 * bias_bytes + 8 * 1024 * 1024))

    kernel = functools.partial(_shift_gelu_kernel, approximate=approximate)

    out = pl.pallas_call(
        kernel,
        out_shape=jax.ShapeDtypeStruct((Mg, Nk), x.dtype),
        grid=grid,
        in_specs=[
            pl.BlockSpec((tm, tn), lambda i, j: (i, j)),   # x tile
            pl.BlockSpec((1, tn), lambda i, j: (0, j)),    # bias (resident per lane tile)
        ],
        out_specs=pl.BlockSpec((tm, tn), lambda i, j: (i, j)),
        compiler_params=pltpu.CompilerParams(
            dimension_semantics=("parallel", "parallel"),
            vmem_limit_bytes=int(vmem_limit),
        ),
    )(xg, bias_k)

    out = out.reshape(Mp, N)
    if Mp != M:
        out = out[:M]
    return out.reshape(orig_shape)


if __name__ == "__main__":
    num_features = 32
    batch, seq = 2, 8   # 16 rows total -> exercises the lane-folding path

    key = jax.random.PRNGKey(0)
    kx, kb = jax.random.split(key)
    x = jax.random.normal(kx, (batch, seq, num_features), dtype=jnp.float32)
    # torch reset_parameters: uniform(bias, 0.0, 1.0)
    bias = jax.random.uniform(kb, (num_features,), dtype=jnp.float32,
                              minval=0.0, maxval=1.0)

    out = shift_gelu(x, bias)
    out = jax.block_until_ready(out)

    # Reference check (exact-erf GELU of shifted input).
    ref = jax.nn.gelu(x + bias[None, None, :], approximate=False)
    assert out.shape == x.shape and out.dtype == x.dtype
    assert jnp.allclose(out, ref, atol=1e-5, rtol=1e-5)

    print("KERNEL_OK")
</pallas_src>

<mosaic_0001>
module attributes {stable_mosaic.version = 11 : i64} {
  func.func @_shift_gelu_kernel(%arg0: i32, %arg1: i32, %arg2: memref<4x128xf32, #tpu.memory_space<vmem>>, %arg3: memref<1x128xf32, #tpu.memory_space<vmem>>, %arg4: memref<4x128xf32, #tpu.memory_space<vmem>>) attributes {dimension_semantics = [#tpu.dimension_semantics<parallel>, #tpu.dimension_semantics<parallel>], iteration_bounds = array<i64: 1, 1>, scalar_prefetch = 0 : i64, scratch_operands = 0 : i64, tpu.core_type = #tpu.core_type<tc>, window_params = [{transform_indices = @transform_0, window_bounds = array<i64: 4, 128>}, {transform_indices = @transform_1, window_bounds = array<i64: 1, 128>}, {transform_indices = @transform_2, window_bounds = array<i64: 4, 128>}]} {
    %c0 = arith.constant 0 : index
    %c0_0 = arith.constant 0 : index
    %0 = vector.load %arg2[%c0, %c0_0] : memref<4x128xf32, #tpu.memory_space<vmem>>, vector<4x128xf32>
    %c0_1 = arith.constant 0 : index
    %c0_2 = arith.constant 0 : index
    %1 = vector.load %arg3[%c0_1, %c0_2] : memref<1x128xf32, #tpu.memory_space<vmem>>, vector<1x128xf32>
    %2 = vector.broadcast %1 : vector<1x128xf32> to vector<4x128xf32>
    %3 = arith.addf %0, %2 : vector<4x128xf32>
    %cst = arith.constant 5.000000e-01 : f32
    %4 = vector.broadcast %cst : f32 to vector<4x128xf32>
    %5 = arith.mulf %4, %3 : vector<4x128xf32>
    %cst_3 = arith.constant 0.707106769 : f32
    %6 = vector.broadcast %cst_3 : f32 to vector<4x128xf32>
    %7 = arith.mulf %3, %6 : vector<4x128xf32>
    %8 = math.erf %7 : vector<4x128xf32>
    %cst_4 = arith.constant 1.000000e+00 : f32
    %9 = vector.broadcast %cst_4 : f32 to vector<4x128xf32>
    %10 = arith.addf %9, %8 : vector<4x128xf32>
    %11 = arith.mulf %5, %10 : vector<4x128xf32>
    %c0_5 = arith.constant 0 : index
    %c0_6 = arith.constant 0 : index
    %12 = vector.load %arg4[%c0_5, %c0_6] : memref<4x128xf32, #tpu.memory_space<vmem>>, vector<4x128xf32>
    tpu.vector_store %arg4[%c0_5, %c0_6], %11 {strides = array<i32>} : memref<4x128xf32, #tpu.memory_space<vmem>>, vector<4x128xf32>,
    return
  }
  func.func @transform_0(%arg0: i32, %arg1: i32) -> (i32, i32) {
    %c0_i32 = arith.constant 0 : i32
    return %arg0, %arg1 : i32, i32
  }
  func.func @transform_1(%arg0: i32, %arg1: i32) -> (i32, i32) {
    %c0_i32 = arith.constant 0 : i32
    %c0_i32_0 = arith.constant 0 : i32
    return %c0_i32, %arg1 : i32, i32
  }
  func.func @transform_2(%arg0: i32, %arg1: i32) -> (i32, i32) {
    %c0_i32 = arith.constant 0 : i32
    return %arg0, %arg1 : i32, i32
  }
}

</mosaic_0001>

<bundles_post_ra>
// kernel: tpu_custom_call.1
= control target key start
LH: loop header
LB: loop body
LE: loop exit
PB: predicated region body
PF: predicated region fallthrough
CT: control target
= control target key end

     0   :  { %7 = vsyncpa [#allocation3], 0  ;;  %s151_s0 = inlined_call_operand.hbm [shape: f32[4,128], index: 0, kind: input, shape index: {}]   ;;  %s152_s1 = inlined_call_operand.vmem [shape: f32[1,128], index: 1, kind: input, shape index: {}]   ;;  %s153_s2 = inlined_call_operand.hbm [shape: f32[4,128], index: 2, kind: output, shape index: {}]  }
   0x1   :  { %8 = vsyncpa [#allocation4], 0  ;;  %s107_s9 = smov [#allocation2]   ;;  %s59_s13 = scalar_lea.hbm %s151_s0, 64 }
   0x2   :  { %s15_s10 = sshll.u32 %s107_s9, 4  ;;  %p60_p0 = scmp.ne.s32.totalorder %s151_s0, %s59_s13  ;;  %s16_s10 = int_to_ptr.vmem [resolvable:$true] %s15_s10 }
   0x3   :  { %p63_p1 = scmp.lt.u32.totalorder %s59_s13, %s151_s0 }
   0x5   :  { %p65_p2 = pnand %p63_p1, %p60_p0 }
   0x7   :  { %68 = shalt.err (!%p65_p2)
}
   0x8   :  { %s69_s18 = scalar_lea.vmem %s16_s10, 64  ;;  %p74_p4 = scmp.lt.s32.totalorder %s16_s10, %s16_s10 }
   0x9   :  { %p70_p3 = scmp.ne.s32.totalorder %s16_s10, %s69_s18  ;;  %p75_p5 = scmp.lt.s32.totalorder %s69_s18, %s69_s18 }
   0xb   :  { %p76_p6 = por %p75_p5, %p74_p4 }
   0xd   :  { %p77_p7 = pnand %p76_p6, %p70_p3 }
   0xf   :  { %80 = shalt.err (!%p77_p7)
}
  0x10   :  { %18 = dma.hbm_to_vmem [thread:$0]  %s151_s0, 64, %s16_s10, [#allocation3]  }
  0x11   :  { %103 = dma.done.wait [#allocation3], 64  }
  0x12   :  { %104 = vsyncadd [#allocation3], 4294967232  ;;  %v24_v0 = vld [vmem:[#allocation2] sm:$0xf]  ;;  %s108_s23 = smov [#allocation5]  }
  0x13   :  { %v54_v1 = vld [vmem:[%s152_s1] ss:$0 sm:$0xff]  ;;  %s45_s24 = sshll.u32 %s108_s23, 4  ;;  %s46_s24 = int_to_ptr.vmem [resolvable:$true] %s45_s24 }
  0x14   :  { %v32_v2 = vadd.f32 %v54_v1, %v24_v0  ;;  %s81_s25 = scalar_lea.vmem %s46_s24, 64  ;;  %p86_p9 = scmp.lt.s32.totalorder %s46_s24, %s46_s24 }
  0x15   :  { %p82_p8 = scmp.ne.s32.totalorder %s46_s24, %s81_s25  ;;  %p87_p10 = scmp.lt.s32.totalorder %s81_s25, %s81_s25 }
  0x16   :  { %v34_v3 = vmul.f32 0.70710677, %v32_v2  ;;  %v33_v4 = vmul.f32 0.5, %v32_v2 }
  0x17   :  { %p88_p11 = por %p87_p10, %p86_p9 }
  0x18   :  { %57 = verf.f32 %v34_v3 }
  0x19   :  { %p89_p12 = pnand %p88_p11, %p82_p8 }
  0x22   :  { %v58_v5 = vpop.eup %57 }
  0x23   :  { %v36_v6 = vadd.f32 1.0, %v58_v5 }
  0x25   :  { %v37_v7 = vmul.f32 %v36_v6, %v33_v4 }
  0x27   :  { %38 = vst [vmem:[#allocation5] sm:$0xf] %v37_v7 }
  0x28   :  { %92 = shalt.err (!%p89_p12)
}
  0x29   :  { %s93_s26 = scalar_lea.hbm %s153_s2, 64 }
  0x2a   :  { %p94_p13 = scmp.ne.s32.totalorder %s153_s2, %s93_s26  ;;  %p97_p0 = scmp.lt.u32.totalorder %s93_s26, %s153_s2 }
  0x2c   :  { %p99_p1 = pnand %p97_p0, %p94_p13 }
  0x2e   :  { %102 = shalt.err (!%p99_p1)
}
  0x2f   :  { %48 = dma.vmem_to_hbm [thread:$0]  %s46_s24, 64, %s153_s2, [#allocation4]  }
  0x30   :  { %105 = dma.done.wait [#allocation4], 64  }
  0x31   :  { %106 = vsyncadd [#allocation4], 4294967232 }
  0x32   :  { %52 = vsyncpa [#allocation3], 1 }
  0x33   :  { %53 = vsyncpa [#allocation4], 1 }

</bundles_post_ra>
